<compile_context>
chip_gen: v6e
topology: v6e:2x2x1
jax: 0.10.0
libtpu: 0.0.40
codegen_flags: <defaults>
</compile_context>

<pallas_src>
import functools

import jax
import jax.numpy as jnp
from jax.experimental import pallas as pl
from jax.experimental.pallas import tpu as pltpu

BN_EPS = 1e-5
LANE = 128
SUBLANE = 8


def _round_up(n, m):
    return ((n + m - 1) // m) * m


def _pad_to(a, shape):
    pads = [(0, t - s) for s, t in zip(a.shape, shape)]
    return jnp.pad(a, pads)


def mlp_decoder_kernel(
    mrow_ref, x_ref,
    w1_ref, b1_ref, g1_ref, be1_ref,
    w2_ref, b2_ref, g2_ref, be2_ref,
    w3_ref, b3_ref, g3_ref, be3_ref,
    w4_ref, b4_ref,
    o_ref,
):
    # mrow: (1, Bp) row holding 1/B on valid batch rows, 0 on batch padding,
    # so mrow @ h is exactly the batch mean of h over the real batch.
    mrow = mrow_ref[...]
    x = x_ref[...]

    def fc_relu_bn(h, w_ref, b_ref, g_ref, be_ref):
        # Linear (MXU) + bias + ReLU.
        h = jnp.dot(h, w_ref[...], preferred_element_type=jnp.float32) + b_ref[...]
        h = jnp.maximum(h, 0.0)
        # Single-pass BN stats via MXU ones-row matmuls (no axis=0 XLU reduce).
        mean = jnp.dot(mrow, h, preferred_element_type=jnp.float32)        # (1, N)
        e2 = jnp.dot(mrow, h * h, preferred_element_type=jnp.float32)      # (1, N)
        var = e2 - mean * mean                                             # biased var
        inv = jax.lax.rsqrt(var + BN_EPS)
        # Fold gamma / inv / mean / beta into one per-feature scale + shift:
        #   (h - mean) * inv * gamma + beta  ==  h * scale + shift
        scale = g_ref[...] * inv
        shift = be_ref[...] - mean * scale
        return h * scale + shift

    h = fc_relu_bn(x, w1_ref, b1_ref, g1_ref, be1_ref)
    h = fc_relu_bn(h, w2_ref, b2_ref, g2_ref, be2_ref)
    h = fc_relu_bn(h, w3_ref, b3_ref, g3_ref, be3_ref)

    # fc4 (no activation / no BN). Output block is lane-dense (padded to 128).
    out = jnp.dot(h, w4_ref[...], preferred_element_type=jnp.float32) + b4_ref[...]
    o_ref[...] = out.astype(o_ref.dtype)


@functools.partial(jax.jit, static_argnames=())
def mlp_decoder(x, params):
    (w1, b1, g1, be1, w2, b2, g2, be2, w3, b3, g3, be3, w4, b4) = params
    B, in_dim = x.shape
    hidden_dim = w1.shape[1]
    out_dim = w3.shape[1]
    binary = w4.shape[1]

    # Pad batch to a sublane multiple and all feature dims to lane multiples.
    Bp = _round_up(B, SUBLANE)
    Ip = _round_up(in_dim, LANE)
    Hp = _round_up(hidden_dim, LANE)
    Op = _round_up(out_dim, LANE)
    Kp = _round_up(binary, LANE)

    xp = _pad_to(x.astype(jnp.float32), (Bp, Ip))

    # Batch-mask row: 1/B on real rows, 0 on padded rows -> exact batch stats.
    mrow = jnp.concatenate(
        [jnp.full((1, B), 1.0 / B, jnp.float32),
         jnp.zeros((1, Bp - B), jnp.float32)],
        axis=1,
    )

    # Zero-padded params: padded feature columns stay exactly 0 through every
    # layer (zero weights/bias/gamma/beta), so they never contaminate results.
    args = (
        mrow, xp,
        _pad_to(w1, (Ip, Hp)), _pad_to(b1, (1, Hp)), _pad_to(g1, (1, Hp)), _pad_to(be1, (1, Hp)),
        _pad_to(w2, (Hp, Hp)), _pad_to(b2, (1, Hp)), _pad_to(g2, (1, Hp)), _pad_to(be2, (1, Hp)),
        _pad_to(w3, (Hp, Op)), _pad_to(b3, (1, Op)), _pad_to(g3, (1, Op)), _pad_to(be3, (1, Op)),
        _pad_to(w4, (Op, Kp)), _pad_to(b4, (1, Kp)),
    )

    full = lambda a: pl.BlockSpec(a.shape, lambda: tuple(0 for _ in a.shape))

    out_padded = pl.pallas_call(
        mlp_decoder_kernel,
        out_shape=jax.ShapeDtypeStruct((Bp, Kp), jnp.float32),
        grid=(),
        in_specs=[full(a) for a in args],
        out_specs=pl.BlockSpec((Bp, Kp), lambda: (0, 0)),
        compiler_params=pltpu.CompilerParams(vmem_limit_bytes=32 * 1024 * 1024),
    )(*args)

    # Slice the lane-padded output back to the logical (B, binary) shape.
    return out_padded[:B, :binary]


def init_params(key, in_dim, hidden_dim, out_dim, binary):
    """Deterministic synthetic params with nn.Linear / nn.BatchNorm1d shapes."""
    ks = jax.random.split(key, 8)

    def linear(kw, kb, fan_in, fan_out):
        bound = 1.0 / jnp.sqrt(fan_in)
        # stored as (in, out)  (== PyTorch weight (out, in) transposed)
        w = jax.random.uniform(kw, (fan_in, fan_out), jnp.float32, -bound, bound)
        b = jax.random.uniform(kb, (1, fan_out), jnp.float32, -bound, bound)
        return w, b

    w1, b1 = linear(ks[0], ks[1], in_dim, hidden_dim)
    w2, b2 = linear(ks[2], ks[3], hidden_dim, hidden_dim)
    w3, b3 = linear(ks[4], ks[5], hidden_dim, out_dim)
    w4, b4 = linear(ks[6], ks[7], out_dim, binary)

    # BatchNorm1d affine params (PyTorch default init: gamma=1, beta=0)
    g1, be1 = jnp.ones((1, hidden_dim), jnp.float32), jnp.zeros((1, hidden_dim), jnp.float32)
    g2, be2 = jnp.ones((1, hidden_dim), jnp.float32), jnp.zeros((1, hidden_dim), jnp.float32)
    g3, be3 = jnp.ones((1, out_dim), jnp.float32), jnp.zeros((1, out_dim), jnp.float32)

    return (w1, b1, g1, be1, w2, b2, g2, be2, w3, b3, g3, be3, w4, b4)


def mlp_decoder_ref(x, params):
    """Pure-JAX reference of the same forward pass (two-pass BN, like PyTorch)."""
    (w1, b1, g1, be1, w2, b2, g2, be2, w3, b3, g3, be3, w4, b4) = params

    def bn(h, g, be):
        m = jnp.mean(h, axis=0, keepdims=True)
        v = jnp.mean((h - m) ** 2, axis=0, keepdims=True)
        return (h - m) / jnp.sqrt(v + BN_EPS) * g + be

    h = bn(jax.nn.relu(x @ w1 + b1), g1, be1)
    h = bn(jax.nn.relu(h @ w2 + b2), g2, be2)
    h = bn(jax.nn.relu(h @ w3 + b3), g3, be3)
    return h @ w4 + b4


if __name__ == "__main__":
    key = jax.random.PRNGKey(0)
    k_x, k_p = jax.random.split(key)

    B, in_dim, hidden_dim, out_dim, binary = 8, 16, 32, 16, 2

    x = jax.random.normal(k_x, (B, in_dim), jnp.float32)
    params = init_params(k_p, in_dim, hidden_dim, out_dim, binary)

    out = mlp_decoder(x, params)
    jax.block_until_ready(out)

    ref = mlp_decoder_ref(x, params)
    assert out.shape == (B, binary)
    assert jnp.allclose(out, ref, atol=1e-3, rtol=1e-3), "mismatch vs reference"

    print("KERNEL_OK")
</pallas_src>

<mosaic_0001>
module attributes {stable_mosaic.version = 11 : i64} {
  func.func @mlp_decoder_kernel(%arg0: memref<1x8xf32, #tpu.memory_space<vmem>>, %arg1: memref<8x128xf32, #tpu.memory_space<vmem>>, %arg2: memref<128x128xf32, #tpu.memory_space<vmem>>, %arg3: memref<1x128xf32, #tpu.memory_space<vmem>>, %arg4: memref<1x128xf32, #tpu.memory_space<vmem>>, %arg5: memref<1x128xf32, #tpu.memory_space<vmem>>, %arg6: memref<128x128xf32, #tpu.memory_space<vmem>>, %arg7: memref<1x128xf32, #tpu.memory_space<vmem>>, %arg8: memref<1x128xf32, #tpu.memory_space<vmem>>, %arg9: memref<1x128xf32, #tpu.memory_space<vmem>>, %arg10: memref<128x128xf32, #tpu.memory_space<vmem>>, %arg11: memref<1x128xf32, #tpu.memory_space<vmem>>, %arg12: memref<1x128xf32, #tpu.memory_space<vmem>>, %arg13: memref<1x128xf32, #tpu.memory_space<vmem>>, %arg14: memref<128x128xf32, #tpu.memory_space<vmem>>, %arg15: memref<1x128xf32, #tpu.memory_space<vmem>>, %arg16: memref<8x128xf32, #tpu.memory_space<vmem>>) attributes {dimension_semantics = [], scalar_prefetch = 0 : i64, scratch_operands = 0 : i64, tpu.core_type = #tpu.core_type<tc>} {
    %c0 = arith.constant 0 : index
    %c0_0 = arith.constant 0 : index
    %0 = vector.load %arg0[%c0, %c0_0] : memref<1x8xf32, #tpu.memory_space<vmem>>, vector<1x8xf32>
    %c0_1 = arith.constant 0 : index
    %c0_2 = arith.constant 0 : index
    %1 = vector.load %arg1[%c0_1, %c0_2] : memref<8x128xf32, #tpu.memory_space<vmem>>, vector<8x128xf32>
    %c0_3 = arith.constant 0 : index
    %c0_4 = arith.constant 0 : index
    %2 = vector.load %arg2[%c0_3, %c0_4] : memref<128x128xf32, #tpu.memory_space<vmem>>, vector<128x128xf32>
    %cst = arith.constant dense<0.000000e+00> : vector<8x128xf32>
    %3 = tpu.matmul %1, %2, %cst {dimension_numbers = #tpu.dot_dimension_numbers<[1], [0], [0], [1], [0, 0, 1, 1], [], []>} : vector<8x128xf32>, vector<128x128xf32>, vector<8x128xf32> -> vector<8x128xf32>
    %c0_5 = arith.constant 0 : index
    %c0_6 = arith.constant 0 : index
    %4 = vector.load %arg3[%c0_5, %c0_6] : memref<1x128xf32, #tpu.memory_space<vmem>>, vector<1x128xf32>
    %5 = vector.broadcast %4 : vector<1x128xf32> to vector<8x128xf32>
    %6 = arith.addf %3, %5 : vector<8x128xf32>
    %cst_7 = arith.constant 0.000000e+00 : f32
    %7 = vector.broadcast %cst_7 : f32 to vector<8x128xf32>
    %8 = arith.maximumf %6, %7 : vector<8x128xf32>
    %cst_8 = arith.constant dense<0.000000e+00> : vector<1x128xf32>
    %9 = tpu.matmul %0, %8, %cst_8 {dimension_numbers = #tpu.dot_dimension_numbers<[1], [0], [0], [1], [0, 0, 1, 1], [], []>} : vector<1x8xf32>, vector<8x128xf32>, vector<1x128xf32> -> vector<1x128xf32>
    %10 = arith.mulf %8, %8 : vector<8x128xf32>
    %cst_9 = arith.constant dense<0.000000e+00> : vector<1x128xf32>
    %11 = tpu.matmul %0, %10, %cst_9 {dimension_numbers = #tpu.dot_dimension_numbers<[1], [0], [0], [1], [0, 0, 1, 1], [], []>} : vector<1x8xf32>, vector<8x128xf32>, vector<1x128xf32> -> vector<1x128xf32>
    %12 = arith.mulf %9, %9 : vector<1x128xf32>
    %13 = arith.subf %11, %12 : vector<1x128xf32>
    %cst_10 = arith.constant 9.99999974E-6 : f32
    %14 = vector.broadcast %cst_10 : f32 to vector<1x128xf32>
    %15 = arith.addf %13, %14 : vector<1x128xf32>
    %16 = math.rsqrt %15 : vector<1x128xf32>
    %c0_11 = arith.constant 0 : index
    %c0_12 = arith.constant 0 : index
    %17 = vector.load %arg4[%c0_11, %c0_12] : memref<1x128xf32, #tpu.memory_space<vmem>>, vector<1x128xf32>
    %18 = arith.mulf %17, %16 : vector<1x128xf32>
    %c0_13 = arith.constant 0 : index
    %c0_14 = arith.constant 0 : index
    %19 = vector.load %arg5[%c0_13, %c0_14] : memref<1x128xf32, #tpu.memory_space<vmem>>, vector<1x128xf32>
    %20 = arith.mulf %9, %18 : vector<1x128xf32>
    %21 = arith.subf %19, %20 : vector<1x128xf32>
    %22 = vector.broadcast %18 : vector<1x128xf32> to vector<8x128xf32>
    %23 = arith.mulf %8, %22 : vector<8x128xf32>
    %24 = vector.broadcast %21 : vector<1x128xf32> to vector<8x128xf32>
    %25 = arith.addf %23, %24 : vector<8x128xf32>
    %c0_15 = arith.constant 0 : index
    %c0_16 = arith.constant 0 : index
    %26 = vector.load %arg6[%c0_15, %c0_16] : memref<128x128xf32, #tpu.memory_space<vmem>>, vector<128x128xf32>
    %cst_17 = arith.constant dense<0.000000e+00> : vector<8x128xf32>
    %27 = tpu.matmul %25, %26, %cst_17 {dimension_numbers = #tpu.dot_dimension_numbers<[1], [0], [0], [1], [0, 0, 1, 1], [], []>} : vector<8x128xf32>, vector<128x128xf32>, vector<8x128xf32> -> vector<8x128xf32>
    %c0_18 = arith.constant 0 : index
    %c0_19 = arith.constant 0 : index
    %28 = vector.load %arg7[%c0_18, %c0_19] : memref<1x128xf32, #tpu.memory_space<vmem>>, vector<1x128xf32>
    %29 = vector.broadcast %28 : vector<1x128xf32> to vector<8x128xf32>
    %30 = arith.addf %27, %29 : vector<8x128xf32>
    %cst_20 = arith.constant 0.000000e+00 : f32
    %31 = vector.broadcast %cst_20 : f32 to vector<8x128xf32>
    %32 = arith.maximumf %30, %31 : vector<8x128xf32>
    %cst_21 = arith.constant dense<0.000000e+00> : vector<1x128xf32>
    %33 = tpu.matmul %0, %32, %cst_21 {dimension_numbers = #tpu.dot_dimension_numbers<[1], [0], [0], [1], [0, 0, 1, 1], [], []>} : vector<1x8xf32>, vector<8x128xf32>, vector<1x128xf32> -> vector<1x128xf32>
    %34 = arith.mulf %32, %32 : vector<8x128xf32>
    %cst_22 = arith.constant dense<0.000000e+00> : vector<1x128xf32>
    %35 = tpu.matmul %0, %34, %cst_22 {dimension_numbers = #tpu.dot_dimension_numbers<[1], [0], [0], [1], [0, 0, 1, 1], [], []>} : vector<1x8xf32>, vector<8x128xf32>, vector<1x128xf32> -> vector<1x128xf32>
    %36 = arith.mulf %33, %33 : vector<1x128xf32>
    %37 = arith.subf %35, %36 : vector<1x128xf32>
    %cst_23 = arith.constant 9.99999974E-6 : f32
    %38 = vector.broadcast %cst_23 : f32 to vector<1x128xf32>
    %39 = arith.addf %37, %38 : vector<1x128xf32>
    %40 = math.rsqrt %39 : vector<1x128xf32>
    %c0_24 = arith.constant 0 : index
    %c0_25 = arith.constant 0 : index
    %41 = vector.load %arg8[%c0_24, %c0_25] : memref<1x128xf32, #tpu.memory_space<vmem>>, vector<1x128xf32>
    %42 = arith.mulf %41, %40 : vector<1x128xf32>
    %c0_26 = arith.constant 0 : index
    %c0_27 = arith.constant 0 : index
    %43 = vector.load %arg9[%c0_26, %c0_27] : memref<1x128xf32, #tpu.memory_space<vmem>>, vector<1x128xf32>
    %44 = arith.mulf %33, %42 : vector<1x128xf32>
    %45 = arith.subf %43, %44 : vector<1x128xf32>
    %46 = vector.broadcast %42 : vector<1x128xf32> to vector<8x128xf32>
    %47 = arith.mulf %32, %46 : vector<8x128xf32>
    %48 = vector.broadcast %45 : vector<1x128xf32> to vector<8x128xf32>
    %49 = arith.addf %47, %48 : vector<8x128xf32>
    %c0_28 = arith.constant 0 : index
    %c0_29 = arith.constant 0 : index
    %50 = vector.load %arg10[%c0_28, %c0_29] : memref<128x128xf32, #tpu.memory_space<vmem>>, vector<128x128xf32>
    %cst_30 = arith.constant dense<0.000000e+00> : vector<8x128xf32>
    %51 = tpu.matmul %49, %50, %cst_30 {dimension_numbers = #tpu.dot_dimension_numbers<[1], [0], [0], [1], [0, 0, 1, 1], [], []>} : vector<8x128xf32>, vector<128x128xf32>, vector<8x128xf32> -> vector<8x128xf32>
    %c0_31 = arith.constant 0 : index
    %c0_32 = arith.constant 0 : index
    %52 = vector.load %arg11[%c0_31, %c0_32] : memref<1x128xf32, #tpu.memory_space<vmem>>, vector<1x128xf32>
    %53 = vector.broadcast %52 : vector<1x128xf32> to vector<8x128xf32>
    %54 = arith.addf %51, %53 : vector<8x128xf32>
    %cst_33 = arith.constant 0.000000e+00 : f32
    %55 = vector.broadcast %cst_33 : f32 to vector<8x128xf32>
    %56 = arith.maximumf %54, %55 : vector<8x128xf32>
    %cst_34 = arith.constant dense<0.000000e+00> : vector<1x128xf32>
    %57 = tpu.matmul %0, %56, %cst_34 {dimension_numbers = #tpu.dot_dimension_numbers<[1], [0], [0], [1], [0, 0, 1, 1], [], []>} : vector<1x8xf32>, vector<8x128xf32>, vector<1x128xf32> -> vector<1x128xf32>
    %58 = arith.mulf %56, %56 : vector<8x128xf32>
    %cst_35 = arith.constant dense<0.000000e+00> : vector<1x128xf32>
    %59 = tpu.matmul %0, %58, %cst_35 {dimension_numbers = #tpu.dot_dimension_numbers<[1], [0], [0], [1], [0, 0, 1, 1], [], []>} : vector<1x8xf32>, vector<8x128xf32>, vector<1x128xf32> -> vector<1x128xf32>
    %60 = arith.mulf %57, %57 : vector<1x128xf32>
    %61 = arith.subf %59, %60 : vector<1x128xf32>
    %cst_36 = arith.constant 9.99999974E-6 : f32
    %62 = vector.broadcast %cst_36 : f32 to vector<1x128xf32>
    %63 = arith.addf %61, %62 : vector<1x128xf32>
    %64 = math.rsqrt %63 : vector<1x128xf32>
    %c0_37 = arith.constant 0 : index
    %c0_38 = arith.constant 0 : index
    %65 = vector.load %arg12[%c0_37, %c0_38] : memref<1x128xf32, #tpu.memory_space<vmem>>, vector<1x128xf32>
    %66 = arith.mulf %65, %64 : vector<1x128xf32>
    %c0_39 = arith.constant 0 : index
    %c0_40 = arith.constant 0 : index
    %67 = vector.load %arg13[%c0_39, %c0_40] : memref<1x128xf32, #tpu.memory_space<vmem>>, vector<1x128xf32>
    %68 = arith.mulf %57, %66 : vector<1x128xf32>
    %69 = arith.subf %67, %68 : vector<1x128xf32>
    %70 = vector.broadcast %66 : vector<1x128xf32> to vector<8x128xf32>
    %71 = arith.mulf %56, %70 : vector<8x128xf32>
    %72 = vector.broadcast %69 : vector<1x128xf32> to vector<8x128xf32>
    %73 = arith.addf %71, %72 : vector<8x128xf32>
    %c0_41 = arith.constant 0 : index
    %c0_42 = arith.constant 0 : index
    %74 = vector.load %arg14[%c0_41, %c0_42] : memref<128x128xf32, #tpu.memory_space<vmem>>, vector<128x128xf32>
    %cst_43 = arith.constant dense<0.000000e+00> : vector<8x128xf32>
    %75 = tpu.matmul %73, %74, %cst_43 {dimension_numbers = #tpu.dot_dimension_numbers<[1], [0], [0], [1], [0, 0, 1, 1], [], []>} : vector<8x128xf32>, vector<128x128xf32>, vector<8x128xf32> -> vector<8x128xf32>
    %c0_44 = arith.constant 0 : index
    %c0_45 = arith.constant 0 : index
    %76 = vector.load %arg15[%c0_44, %c0_45] : memref<1x128xf32, #tpu.memory_space<vmem>>, vector<1x128xf32>
    %77 = vector.broadcast %76 : vector<1x128xf32> to vector<8x128xf32>
    %78 = arith.addf %75, %77 : vector<8x128xf32>
    %c0_46 = arith.constant 0 : index
    %c0_47 = arith.constant 0 : index
    %79 = vector.load %arg16[%c0_46, %c0_47] : memref<8x128xf32, #tpu.memory_space<vmem>>, vector<8x128xf32>
    tpu.vector_store %arg16[%c0_46, %c0_47], %78 {strides = array<i32>} : memref<8x128xf32, #tpu.memory_space<vmem>>, vector<8x128xf32>,
    return
  }
}

</mosaic_0001>

<bundles_post_ra>
// kernel: mlp_decoder.1
= control target key start
LH: loop header
LB: loop body
LE: loop exit
PB: predicated region body
PF: predicated region fallthrough
CT: control target
= control target key end

     0   :  { %v1199_v0 = vmov 0.0   ;;  %vm1200_vm0 = vmmov 0   ;;  %vm149_vm1 = vcmask 64512   ;;  %v304_v48 = vlaneseq  ;;  %s1647_s2 = inlined_call_operand.vmem [shape: f32[128,128], index: 2, kind: input, shape index: {}]   ;;  %s1648_s1 = inlined_call_operand.vmem [shape: f32[8,128], index: 1, kind: input, shape index: {}]   ;;  %s1649_s3 = inlined_call_operand.vmem [shape: f32[1,128], index: 3, kind: input, shape index: {}]   ;;  %s1650_s0 = inlined_call_operand.vmem [shape: f32[1,8], index: 0, kind: input, shape index: {}]   ;;  %s1651_s6 = inlined_call_operand.vmem [shape: f32[128,128], index: 6, kind: input, shape index: {}]   ;;  %s1652_s4 = inlined_call_operand.vmem [shape: f32[1,128], index: 4, kind: input, shape index: {}]   ;;  %s1653_s5 = inlined_call_operand.vmem [shape: f32[1,128], index: 5, kind: input, shape index: {}]   ;;  %s1654_s7 = inlined_call_operand.vmem [shape: f32[1,128], index: 7, kind: input, shape index: {}]   ;;  %s1655_s10 = inlined_call_operand.vmem [shape: f32[128,128], index: 10, kind: input, shape index: {}]   ;;  %s1656_s8 = inlined_call_operand.vmem [shape: f32[1,128], index: 8, kind: input, shape index: {}]   ;;  %s1657_s9 = inlined_call_operand.vmem [shape: f32[1,128], index: 9, kind: input, shape index: {}]   ;;  %s1658_s11 = inlined_call_operand.vmem [shape: f32[1,128], index: 11, kind: input, shape index: {}]   ;;  %s1659_s14 = inlined_call_operand.vmem [shape: f32[128,128], index: 14, kind: input, shape index: {}]   ;;  %s1660_s12 = inlined_call_operand.vmem [shape: f32[1,128], index: 12, kind: input, shape index: {}]   ;;  %s1661_s13 = inlined_call_operand.vmem [shape: f32[1,128], index: 13, kind: input, shape index: {}]   ;;  %s1662_s15 = inlined_call_operand.vmem [shape: f32[1,128], index: 15, kind: input, shape index: {}]   ;;  %s1663_s16 = inlined_call_operand.vmem [shape: f32[8,128], index: 16, kind: output, shape index: {}]  }
   0x1   :  { %1665 = sst [smem:[#allocation2_spill]] %s1647_s2  ;;  %1021 = vmatprep.subr.mxu0 %v1199_v0  ;;  %1053 = vmatprep.mubr.msk.f32.mxu0 %vm1200_vm0, %v1199_v0  ;;  %v54_v17 = vld [vmem:[%s1648_s1] sm:$0xff]  ;;  %v332_v25 = vld [vmem:[%s1651_s6 + $0x78] sm:$0xff]  ;;  %v331_v26 = vld [vmem:[%s1651_s6 + $0x70] sm:$0xff] }
   0x2   :  { %s1666_s23 = sld [smem:[#allocation2_spill]]  ;;  %1056 = vmatprep.subr.mxu1 %v1199_v0  ;;  %1058 = vmatprep.mubr.msk.f32.mxu1 %vm1200_vm0, %v1199_v0  ;;  %v931_v18 = vld [vmem:[%s1649_s3] ss:$0 sm:$0xff]  ;;  %v330_v27 = vld [vmem:[%s1651_s6 + $0x68] sm:$0xff]  ;;  %v328_v29 = vld [vmem:[%s1651_s6 + $0x58] sm:$0xff]  ;;  %v305_v49 = vshrl.u32 %v304_v48, 7 }
   0x3   :  { %v1369_v23 = vld [vmem:[%s1650_s0] sm:$0x1]  ;;  %v327_v30 = vld [vmem:[%s1651_s6 + $0x50] sm:$0xff]  ;;  %v326_v31 = vld [vmem:[%s1651_s6 + $0x48] sm:$0xff] }
   0x4   :  { %v329_v28 = vld [vmem:[%s1651_s6 + $0x60] sm:$0xff]  ;;  %v324_v33 = vld [vmem:[%s1651_s6 + $0x38] sm:$0xff]  ;;  %v323_v34 = vld [vmem:[%s1651_s6 + $0x30] sm:$0xff]  ;;  %v1451_v51 = vsub.s32 0, %v305_v49 }
   0x5   :  { %v325_v32 = vld [vmem:[%s1651_s6 + $0x40] sm:$0xff]  ;;  %v322_v35 = vld [vmem:[%s1651_s6 + $0x28] sm:$0xff]  ;;  %v320_v37 = vld [vmem:[%s1651_s6 + $0x18] sm:$0xff] }
   0x6   :  { %v321_v36 = vld [vmem:[%s1651_s6 + $0x20] sm:$0xff]  ;;  %v319_v38 = vld [vmem:[%s1651_s6 + $0x10] sm:$0xff]  ;;  %v318_v39 = vld [vmem:[%s1651_s6 + $0x8] sm:$0xff] }
   0x7   :  { %v317_v40 = vld [vmem:[%s1651_s6] sm:$0xff]  ;;  %v843_v48 = vld [vmem:[%s1659_s14 + $0x50] sm:$0xff]  ;;  %v842_v49 = vld [vmem:[%s1659_s14 + $0x48] sm:$0xff] }
   0x8   :  { %v70_v1 = vld [vmem:[%s1666_s23 + $0x78] sm:$0xff]  ;;  %v69_v2 = vld [vmem:[%s1666_s23 + $0x70] sm:$0xff]  ;;  %v68_v3 = vld [vmem:[%s1666_s23 + $0x68] sm:$0xff] }
   0x9   :  { %1022 = vmatpush3.msra.mxu0 %v70_v1  ;;  %v67_v4 = vld [vmem:[%s1666_s23 + $0x60] sm:$0xff]  ;;  %v66_v5 = vld [vmem:[%s1666_s23 + $0x58] sm:$0xff]  ;;  %v65_v6 = vld [vmem:[%s1666_s23 + $0x50] sm:$0xff] }
   0xa   :  { %1023 = vmatprep.subr.mxu0 %v1199_v0  ;;  %v64_v7 = vld [vmem:[%s1666_s23 + $0x48] sm:$0xff]  ;;  %v63_v8 = vld [vmem:[%s1666_s23 + $0x40] sm:$0xff]  ;;  %v62_v9 = vld [vmem:[%s1666_s23 + $0x38] sm:$0xff] }
   0xb   :  { %1024 = vmatpush3.msra.mxu0 %v69_v2  ;;  %v61_v10 = vld [vmem:[%s1666_s23 + $0x30] sm:$0xff]  ;;  %v60_v11 = vld [vmem:[%s1666_s23 + $0x28] sm:$0xff]  ;;  %v59_v12 = vld [vmem:[%s1666_s23 + $0x20] sm:$0xff] }
   0xc   :  { %1025 = vmatprep.subr.mxu0 %v1199_v0  ;;  %v58_v13 = vld [vmem:[%s1666_s23 + $0x18] sm:$0xff]  ;;  %v57_v14 = vld [vmem:[%s1666_s23 + $0x10] sm:$0xff]  ;;  %v56_v15 = vld [vmem:[%s1666_s23 + $0x8] sm:$0xff] }
   0xd   :  { %1026 = vmatpush3.msra.mxu0 %v68_v3  ;;  %v55_v16 = vld [vmem:[%s1666_s23] sm:$0xff] }
   0xe   :  { %1027 = vmatprep.subr.mxu0 %v1199_v0  ;;  %v298_v50 = vld [vmem:[%s1652_s4] sm:$0x1] }
   0xf   :  { %1028 = vmatpush3.msra.mxu0 %v67_v4  ;;  %v300_v54 = vld [vmem:[%s1653_s5] sm:$0x1]  ;;  %v590_v4 = vld [vmem:[%s1655_s10 + $0x78] sm:$0xff] }
  0x10   :  { %1029 = vmatprep.subr.mxu0 %v1199_v0  ;;  %v934_v61 = vld [vmem:[%s1654_s7] ss:$0 sm:$0xff] }
  0x11   :  { %1030 = vmatpush3.msra.mxu0 %v66_v5  ;;  %v589_v5 = vld [vmem:[%s1655_s10 + $0x70] sm:$0xff] }
  0x12   :  { %1031 = vmatprep.subr.mxu0 %v1199_v0 }
  0x13   :  { %1032 = vmatpush3.msra.mxu0 %v65_v6  ;;  %v588_v6 = vld [vmem:[%s1655_s10 + $0x68] sm:$0xff] }
  0x14   :  { %1033 = vmatprep.subr.mxu0 %v1199_v0 }
  0x15   :  { %1034 = vmatpush3.msra.mxu0 %v64_v7  ;;  %v587_v7 = vld [vmem:[%s1655_s10 + $0x60] sm:$0xff] }
  0x16   :  { %1035 = vmatprep.subr.mxu0 %v1199_v0 }
  0x17   :  { %1036 = vmatpush3.msra.mxu0 %v63_v8  ;;  %v586_v8 = vld [vmem:[%s1655_s10 + $0x58] sm:$0xff] }
  0x18   :  { %1037 = vmatprep.subr.mxu0 %v1199_v0 }
  0x19   :  { %1038 = vmatpush3.msra.mxu0 %v62_v9  ;;  %v585_v9 = vld [vmem:[%s1655_s10 + $0x50] sm:$0xff] }
  0x1a   :  { %1039 = vmatprep.subr.mxu0 %v1199_v0 }
  0x1b   :  { %1040 = vmatpush3.msra.mxu0 %v61_v10  ;;  %v584_v10 = vld [vmem:[%s1655_s10 + $0x48] sm:$0xff] }
  0x1c   :  { %1041 = vmatprep.subr.mxu0 %v1199_v0 }
  0x1d   :  { %1042 = vmatpush3.msra.mxu0 %v60_v11  ;;  %v583_v11 = vld [vmem:[%s1655_s10 + $0x40] sm:$0xff] }
  0x1e   :  { %1043 = vmatprep.subr.mxu0 %v1199_v0 }
  0x1f   :  { %1044 = vmatpush3.msra.mxu0 %v59_v12  ;;  %v582_v12 = vld [vmem:[%s1655_s10 + $0x38] sm:$0xff] }
  0x20   :  { %1045 = vmatprep.subr.mxu0 %v1199_v0 }
  0x21   :  { %1046 = vmatpush3.msra.mxu0 %v58_v13  ;;  %v581_v13 = vld [vmem:[%s1655_s10 + $0x30] sm:$0xff] }
  0x22   :  { %1047 = vmatprep.subr.mxu0 %v1199_v0 }
  0x23   :  { %1048 = vmatpush3.msra.mxu0 %v57_v14  ;;  %v580_v14 = vld [vmem:[%s1655_s10 + $0x28] sm:$0xff] }
  0x24   :  { %1049 = vmatprep.subr.mxu0 %v1199_v0 }
  0x25   :  { %1050 = vmatpush3.msra.mxu0 %v56_v15  ;;  %v579_v15 = vld [vmem:[%s1655_s10 + $0x20] sm:$0xff] }
  0x26   :  { %1051 = vmatprep.subr.mxu0 %v1199_v0 }
  0x27   :  { %1052 = vmatpush3.msra.mxu0 %v55_v16  ;;  %v578_v16 = vld [vmem:[%s1655_s10 + $0x18] sm:$0xff] }
  0x28   :  { %1054 = vmatmul.mubr.f32.vlgmr.msra.gmra.mxu0 %v54_v17  ;;  %1106 = vmatprep.subr.mxu0 %v1199_v0  ;;  %v577_v17 = vld [vmem:[%s1655_s10 + $0x10] sm:$0xff] }
  0x29   :  { %1108 = vmatprep.mubr.msk.f32.mxu0 %vm1200_vm0, %v1199_v0 }
  0xe8   :  { %v144_v19 = vpop.f32.mrf.mxu0 }
  0xe9   :  { %v145_v20 = vadd.f32 %v931_v18, %v144_v19  ;;  %v576_v18 = vld [vmem:[%s1655_s10 + $0x8] sm:$0xff]  ;;  %v575_v19 = vld [vmem:[%s1655_s10] sm:$0xff] }
  0xea   :  { %v1055_v21 = vpop.f32.mrf.mxu0 }
  0xeb   :  { %v1364_v22 = vmax.f32 %v145_v20, 0.0 }
  0xed   :  { %v223_v24 = vmul.f32 %v1364_v22, %v1364_v22  ;;  %1057 = vmatpush3.msra.mxu1 %v1364_v22 }
  0xee   :  { %1059 = vmatmul.mubr.msk.f32.vlgmr.msra.gmra.mxu1 %vm149_vm1, %v1369_v23  ;;  %1061 = vmatprep.subr.mxu1 %v1199_v0 }
  0xef   :  { %1062 = vmatpush3.msra.mxu1 %v223_v24  ;;  %1063 = vmatprep.mubr.msk.f32.mxu1 %vm1200_vm0, %v1199_v0 }
  0xf0   :  { %1066 = vmatprep.subr.mxu1 %v1199_v0 }
  0xf2   :  { %1064 = vmatmul.mubr.msk.f32.vlgmr.msra.gmra.mxu1 %vm149_vm1, %v1369_v23 }
  0xf3   :  { %1098 = vmatprep.mubr.msk.f32.mxu1 %vm1200_vm0, %v1199_v0  ;;  %1067 = vmatpush3.msra.mxu1 %v332_v25 }
  0xf4   :  { %1068 = vmatprep.subr.mxu1 %v1199_v0 }
  0xf5   :  { %1069 = vmatpush3.msra.mxu1 %v331_v26 }
  0xf6   :  { %1070 = vmatprep.subr.mxu1 %v1199_v0 }
  0xf7   :  { %1071 = vmatpush3.msra.mxu1 %v330_v27 }
  0xf8   :  { %1072 = vmatprep.subr.mxu1 %v1199_v0 }
  0xf9   :  { %1073 = vmatpush3.msra.mxu1 %v329_v28  ;;  %v556_v28 = vld [vmem:[%s1656_s8] sm:$0x1] }
  0xfa   :  { %1074 = vmatprep.subr.mxu1 %v1199_v0 }
  0xfb   :  { %1075 = vmatpush3.msra.mxu1 %v328_v29 }
  0xfc   :  { %1076 = vmatprep.subr.mxu1 %v1199_v0 }
  0xfd   :  { %1077 = vmatpush3.msra.mxu1 %v327_v30 }
  0xfe   :  { %1078 = vmatprep.subr.mxu1 %v1199_v0 }
  0xff   :  { %1079 = vmatpush3.msra.mxu1 %v326_v31  ;;  %v558_v31 = vld [vmem:[%s1657_s9] sm:$0x1] }
 0x100   :  { %1080 = vmatprep.subr.mxu1 %v1199_v0 }
 0x101   :  { %1081 = vmatpush3.msra.mxu1 %v325_v32 }
 0x102   :  { %1082 = vmatprep.subr.mxu1 %v1199_v0 }
 0x103   :  { %1083 = vmatpush3.msra.mxu1 %v324_v33 }
 0x104   :  { %1084 = vmatprep.subr.mxu1 %v1199_v0 }
 0x105   :  { %1085 = vmatpush3.msra.mxu1 %v323_v34 }
 0x106   :  { %1086 = vmatprep.subr.mxu1 %v1199_v0 }
 0x107   :  { %1087 = vmatpush3.msra.mxu1 %v322_v35 }
 0x108   :  { %1088 = vmatprep.subr.mxu1 %v1199_v0 }
 0x109   :  { %1089 = vmatpush3.msra.mxu1 %v321_v36 }
 0x10a   :  { %1090 = vmatprep.subr.mxu1 %v1199_v0 }
 0x10b   :  { %1091 = vmatpush3.msra.mxu1 %v320_v37 }
 0x10c   :  { %1092 = vmatprep.subr.mxu1 %v1199_v0 }
 0x10d   :  { %1093 = vmatpush3.msra.mxu1 %v319_v38  ;;  %v937_v38 = vld [vmem:[%s1658_s11] ss:$0 sm:$0xff] }
 0x10e   :  { %1094 = vmatprep.subr.mxu1 %v1199_v0 }
 0x10f   :  { %1095 = vmatpush3.msra.mxu1 %v318_v39 }
 0x110   :  { %1096 = vmatprep.subr.mxu1 %v1199_v0 }
 0x111   :  { %1097 = vmatpush3.msra.mxu1 %v317_v40 }
 0x112   :  { %1101 = vmatprep.subr.mxu1 %v1199_v0 }
 0x1ae   :  { %v219_v41 = vpop.f32.mrf.mxu1 }
 0x1af   :  { %v294_v43 = vmul.f32 %v219_v41, %v219_v41 }
 0x1b0   :  { %v1060_v42 = vpop.f32.mrf.mxu1 }
 0x1b2   :  { %v290_v44 = vpop.f32.mrf.mxu1 }
 0x1b3   :  { %v295_v45 = vsub.f32 %v290_v44, %v294_v43  ;;  %v848_v44 = vld [vmem:[%s1659_s14 + $0x78] sm:$0xff] }
 0x1b4   :  { %v1065_v46 = vpop.f32.mrf.mxu1 }
 0x1b5   :  { %v296_v47 = vadd.f32 1e-05, %v295_v45  ;;  %v847_v45 = vld [vmem:[%s1659_s14 + $0x70] sm:$0xff]  ;;  %v845_v46 = vld [vmem:[%s1659_s14 + $0x60] sm:$0xff] }
 0x1b7   :  { %1193 = vrsqrt.f32 %v296_v47  ;;  %v844_v47 = vld [vmem:[%s1659_s14 + $0x58] sm:$0xff] }
 0x1c4   :  { %v1194_v52 = vpop.eup %1193 }
 0x1c5   :  { %v299_v53 = vmul.f32 %v1194_v52, %v298_v50  ;;  %v841_v50 = vld [vmem:[%s1659_s14 + $0x40] sm:$0xff]  ;;  %v840_v52 = vld [vmem:[%s1659_s14 + $0x38] sm:$0xff] }
 0x1c7   :  { %v301_v55 = vmul.f32 %v299_v53, %v219_v41  ;;  %v307_v56 = vrot.slane %v299_v53, %v1451_v51  ;;  %v839_v53 = vld [vmem:[%s1659_s14 + $0x30] sm:$0xff] }
 0x1c9   :  { %v302_v57 = vsub.f32 %v300_v54, %v301_v55  ;;  %v309_v58 = vmul.f32 %v307_v56, %v1364_v22  ;;  %v838_v54 = vld [vmem:[%s1659_s14 + $0x28] sm:$0xff]  ;;  %v837_v55 = vld [vmem:[%s1659_s14 + $0x20] sm:$0xff]  ;;  %v836_v56 = vld [vmem:[%s1659_s14 + $0x18] sm:$0xff] }
 0x1cb   :  { %v314_v59 = vrot.slane %v302_v57, %v1451_v51  ;;  %v835_v57 = vld [vmem:[%s1659_s14 + $0x10] sm:$0xff] }
 0x1cd   :  { %v316_v60 = vadd.f32 %v314_v59, %v309_v58  ;;  %v834_v58 = vld [vmem:[%s1659_s14 + $0x8] sm:$0xff]  ;;  %v833_v59 = vld [vmem:[%s1659_s14] sm:$0xff] }
 0x1cf   :  { %1099 = vmatmul.mubr.f32.vlgmr.msra.gmra.mxu1 %v316_v60 }
 0x1d0   :  { %1103 = vmatprep.mubr.msk.f32.mxu1 %vm1200_vm0, %v1199_v0 }
 0x28f   :  { %v406_v62 = vpop.f32.mrf.mxu1 }
 0x290   :  { %v407_v63 = vadd.f32 %v934_v61, %v406_v62 }
 0x291   :  { %v1100_v1 = vpop.f32.mrf.mxu1 }
 0x292   :  { %v1464_v2 = vmax.f32 %v407_v63, 0.0 }
 0x294   :  { %v481_v3 = vmul.f32 %v1464_v2, %v1464_v2  ;;  %1102 = vmatpush3.msra.mxu1 %v1464_v2 }
 0x295   :  { %1104 = vmatmul.mubr.msk.f32.vlgmr.msra.gmra.mxu1 %vm149_vm1, %v1369_v23  ;;  %1111 = vmatprep.subr.mxu1 %v1199_v0 }
 0x296   :  { %1107 = vmatpush3.msra.mxu0 %v481_v3  ;;  %1143 = vmatprep.mubr.msk.f32.mxu1 %vm1200_vm0, %v1199_v0 }
 0x297   :  { %1109 = vmatmul.mubr.msk.f32.vlgmr.msra.gmra.mxu0 %vm149_vm1, %v1369_v23  ;;  %1146 = vmatprep.subr.mxu0 %v1199_v0 }
 0x298   :  { %1148 = vmatprep.mubr.msk.f32.mxu0 %vm1200_vm0, %v1199_v0  ;;  %1112 = vmatpush3.msra.mxu1 %v590_v4  ;;  %v814_v4 = vld [vmem:[%s1660_s12] sm:$0x1] }
 0x299   :  { %1113 = vmatprep.subr.mxu1 %v1199_v0 }
 0x29a   :  { %1114 = vmatpush3.msra.mxu1 %v589_v5 }
 0x29b   :  { %1115 = vmatprep.subr.mxu1 %v1199_v0 }
 0x29c   :  { %1116 = vmatpush3.msra.mxu1 %v588_v6 }
 0x29d   :  { %1117 = vmatprep.subr.mxu1 %v1199_v0 }
 0x29e   :  { %1118 = vmatpush3.msra.mxu1 %v587_v7  ;;  %v816_v7 = vld [vmem:[%s1661_s13] sm:$0x1] }
 0x29f   :  { %1119 = vmatprep.subr.mxu1 %v1199_v0 }
 0x2a0   :  { %1120 = vmatpush3.msra.mxu1 %v586_v8 }
 0x2a1   :  { %1121 = vmatprep.subr.mxu1 %v1199_v0 }
 0x2a2   :  { %1122 = vmatpush3.msra.mxu1 %v585_v9 }
 0x2a3   :  { %1123 = vmatprep.subr.mxu1 %v1199_v0 }
 0x2a4   :  { %1124 = vmatpush3.msra.mxu1 %v584_v10 }
 0x2a5   :  { %1125 = vmatprep.subr.mxu1 %v1199_v0 }
 0x2a6   :  { %1126 = vmatpush3.msra.mxu1 %v583_v11 }
 0x2a7   :  { %1127 = vmatprep.subr.mxu1 %v1199_v0 }
 0x2a8   :  { %1128 = vmatpush3.msra.mxu1 %v582_v12 }
 0x2a9   :  { %1129 = vmatprep.subr.mxu1 %v1199_v0 }
 0x2aa   :  { %1130 = vmatpush3.msra.mxu1 %v581_v13  ;;  %v940_v13 = vld [vmem:[%s1662_s15] ss:$0 sm:$0xff] }
 0x2ab   :  { %1131 = vmatprep.subr.mxu1 %v1199_v0 }
 0x2ac   :  { %1132 = vmatpush3.msra.mxu1 %v580_v14 }
 0x2ad   :  { %1133 = vmatprep.subr.mxu1 %v1199_v0 }
 0x2ae   :  { %1134 = vmatpush3.msra.mxu1 %v579_v15 }
 0x2af   :  { %1135 = vmatprep.subr.mxu1 %v1199_v0 }
 0x2b0   :  { %1136 = vmatpush3.msra.mxu1 %v578_v16 }
 0x2b1   :  { %1137 = vmatprep.subr.mxu1 %v1199_v0 }
 0x2b2   :  { %1138 = vmatpush3.msra.mxu1 %v577_v17 }
 0x2b3   :  { %1139 = vmatprep.subr.mxu1 %v1199_v0 }
 0x2b4   :  { %1140 = vmatpush3.msra.mxu1 %v576_v18 }
 0x2b5   :  { %1141 = vmatprep.subr.mxu1 %v1199_v0 }
 0x2b6   :  { %1142 = vmatpush3.msra.mxu1 %v575_v19 }
 0x355   :  { %v477_v20 = vpop.f32.mrf.mxu1 }
 0x356   :  { %v552_v21 = vmul.f32 %v477_v20, %v477_v20 }
 0x357   :  { %v1105_v22 = vpop.f32.mrf.mxu1  ;;  %v548_v24 = vpop.f32.mrf.mxu0 }
 0x358   :  { %v553_v25 = vsub.f32 %v548_v24, %v552_v21 }
 0x359   :  { %v1110_v26 = vpop.f32.mrf.mxu0 }
 0x35a   :  { %v554_v27 = vadd.f32 1e-05, %v553_v25 }
 0x35c   :  { %1195 = vrsqrt.f32 %v554_v27 }
 0x369   :  { %v1196_v29 = vpop.eup %1195 }
 0x36a   :  { %v557_v30 = vmul.f32 %v1196_v29, %v556_v28 }
 0x36c   :  { %v559_v32 = vmul.f32 %v557_v30, %v477_v20  ;;  %v565_v33 = vrot.slane %v557_v30, %v1451_v51 }
 0x36e   :  { %v560_v34 = vsub.f32 %v558_v31, %v559_v32  ;;  %v567_v35 = vmul.f32 %v565_v33, %v1464_v2 }
 0x370   :  { %v572_v36 = vrot.slane %v560_v34, %v1451_v51 }
 0x372   :  { %v574_v37 = vadd.f32 %v572_v36, %v567_v35 }
 0x374   :  { %1144 = vmatmul.mubr.f32.vlgmr.msra.gmra.mxu1 %v574_v37 }
 0x434   :  { %v664_v39 = vpop.f32.mrf.mxu1 }
 0x435   :  { %v665_v40 = vadd.f32 %v937_v38, %v664_v39 }
 0x436   :  { %v1145_v41 = vpop.f32.mrf.mxu1 }
 0x437   :  { %v1554_v42 = vmax.f32 %v665_v40, 0.0 }
 0x439   :  { %v739_v43 = vmul.f32 %v1554_v42, %v1554_v42  ;;  %1147 = vmatpush3.msra.mxu0 %v1554_v42 }
 0x43a   :  { %1149 = vmatmul.mubr.msk.f32.vlgmr.msra.gmra.mxu0 %vm149_vm1, %v1369_v23  ;;  %1151 = vmatprep.subr.mxu0 %v1199_v0 }
 0x43b   :  { %1152 = vmatpush3.msra.mxu0 %v739_v43  ;;  %1153 = vmatprep.mubr.msk.f32.mxu0 %vm1200_vm0, %v1199_v0 }
 0x43c   :  { %1156 = vmatprep.subr.mxu0 %v1199_v0 }
 0x43e   :  { %1154 = vmatmul.mubr.msk.f32.vlgmr.msra.gmra.mxu0 %vm149_vm1, %v1369_v23  ;;  %v846_v23 = vld [vmem:[%s1659_s14 + $0x68] sm:$0xff] }
 0x43f   :  { %1188 = vmatprep.mubr.msk.f32.mxu0 %vm1200_vm0, %v1199_v0  ;;  %1157 = vmatpush3.msra.mxu0 %v848_v44 }
 0x440   :  { %1158 = vmatprep.subr.mxu0 %v1199_v0 }
 0x441   :  { %1159 = vmatpush3.msra.mxu0 %v847_v45 }
 0x442   :  { %1160 = vmatprep.subr.mxu0 %v1199_v0 }
 0x443   :  { %1161 = vmatpush3.msra.mxu0 %v846_v23 }
 0x444   :  { %1162 = vmatprep.subr.mxu0 %v1199_v0 }
 0x445   :  { %1163 = vmatpush3.msra.mxu0 %v845_v46 }
 0x446   :  { %1164 = vmatprep.subr.mxu0 %v1199_v0 }
 0x447   :  { %1165 = vmatpush3.msra.mxu0 %v844_v47 }
 0x448   :  { %1166 = vmatprep.subr.mxu0 %v1199_v0 }
 0x449   :  { %1167 = vmatpush3.msra.mxu0 %v843_v48 }
 0x44a   :  { %1168 = vmatprep.subr.mxu0 %v1199_v0 }
 0x44b   :  { %1169 = vmatpush3.msra.mxu0 %v842_v49 }
 0x44c   :  { %1170 = vmatprep.subr.mxu0 %v1199_v0 }
 0x44d   :  { %1171 = vmatpush3.msra.mxu0 %v841_v50 }
 0x44e   :  { %1172 = vmatprep.subr.mxu0 %v1199_v0 }
 0x44f   :  { %1173 = vmatpush3.msra.mxu0 %v840_v52 }
 0x450   :  { %1174 = vmatprep.subr.mxu0 %v1199_v0 }
 0x451   :  { %1175 = vmatpush3.msra.mxu0 %v839_v53 }
 0x452   :  { %1176 = vmatprep.subr.mxu0 %v1199_v0 }
 0x453   :  { %1177 = vmatpush3.msra.mxu0 %v838_v54 }
 0x454   :  { %1178 = vmatprep.subr.mxu0 %v1199_v0 }
 0x455   :  { %1179 = vmatpush3.msra.mxu0 %v837_v55 }
 0x456   :  { %1180 = vmatprep.subr.mxu0 %v1199_v0 }
 0x457   :  { %1181 = vmatpush3.msra.mxu0 %v836_v56 }
 0x458   :  { %1182 = vmatprep.subr.mxu0 %v1199_v0 }
 0x459   :  { %1183 = vmatpush3.msra.mxu0 %v835_v57 }
 0x45a   :  { %1184 = vmatprep.subr.mxu0 %v1199_v0 }
 0x45b   :  { %1185 = vmatpush3.msra.mxu0 %v834_v58 }
 0x45c   :  { %1186 = vmatprep.subr.mxu0 %v1199_v0 }
 0x45d   :  { %1187 = vmatpush3.msra.mxu0 %v833_v59 }
 0x4fa   :  { %v735_v60 = vpop.f32.mrf.mxu0 }
 0x4fb   :  { %v810_v62 = vmul.f32 %v735_v60, %v735_v60 }
 0x4fc   :  { %v1150_v61 = vpop.f32.mrf.mxu0 }
 0x4fe   :  { %v806_v63 = vpop.f32.mrf.mxu0 }
 0x4ff   :  { %v811_v1 = vsub.f32 %v806_v63, %v810_v62 }
 0x500   :  { %v1155_v2 = vpop.f32.mrf.mxu0 }
 0x501   :  { %v812_v3 = vadd.f32 1e-05, %v811_v1 }
 0x503   :  { %1197 = vrsqrt.f32 %v812_v3 }
 0x510   :  { %v1198_v5 = vpop.eup %1197 }
 0x511   :  { %v815_v6 = vmul.f32 %v1198_v5, %v814_v4 }
 0x513   :  { %v817_v0 = vmul.f32 %v815_v6, %v735_v60  ;;  %v823_v8 = vrot.slane %v815_v6, %v1451_v51 }
 0x515   :  { %v818_v9 = vsub.f32 %v816_v7, %v817_v0  ;;  %v825_v10 = vmul.f32 %v823_v8, %v1554_v42 }
 0x517   :  { %v830_v11 = vrot.slane %v818_v9, %v1451_v51 }
 0x519   :  { %v832_v12 = vadd.f32 %v830_v11, %v825_v10 }
 0x51b   :  { %1189 = vmatmul.mubr.f32.vlgmr.msra.gmra.mxu0 %v832_v12 }
 0x5db   :  { %v922_v14 = vpop.f32.mrf.mxu0 }
 0x5dc   :  { %v923_v15 = vadd.f32 %v940_v13, %v922_v14 }
 0x5dd   :  { %v1190_v16 = vpop.f32.mrf.mxu0 }
 0x5de   :  { %926 = vst [vmem:[%s1663_s16] sm:$0xff] %v923_v15 }

</bundles_post_ra>
